<compile_context>
chip_gen: v6e
topology: v6e:2x2x1
jax: 0.10.0
libtpu: 0.0.40
codegen_flags: <defaults>
</compile_context>

<pallas_src>
from typing import Dict, Tuple

import jax
import jax.numpy as jnp
from jax.experimental import pallas as pl
from jax.experimental.pallas import tpu as pltpu

LANE = 128


# ---------------------------------------------------------------------------
# Small helpers
# ---------------------------------------------------------------------------
def _round_up(n: int, m: int) -> int:
    return ((n + m - 1) // m) * m


def _round_down(n: int, m: int) -> int:
    return (n // m) * m


def _sublane(dtype) -> int:
    # dtype-aware sublane rounding: f32 -> 8, bf16 -> 16, int8/fp8 -> 32.
    return max(8, 32 // jnp.dtype(dtype).itemsize)


def _vmem_capacity_bytes() -> int:
    try:
        return int(pltpu.get_tpu_info().vmem_capacity_bytes)
    except Exception:
        return 64 << 20  # most conservative per-core VMEM (v7x)


# ---------------------------------------------------------------------------
# Kernel: o = x @ W_cat + b_cat, f32 accumulation over the K grid axis
# ---------------------------------------------------------------------------
def _fused_linear_kernel(x_ref, w_ref, b_ref, o_ref, acc_ref):
    k = pl.program_id(2)

    @pl.when(k == 0)
    def _():
        acc_ref[...] = jnp.zeros_like(acc_ref)

    acc_ref[...] += jnp.dot(x_ref[...], w_ref[...],
                            preferred_element_type=jnp.float32)

    @pl.when(k == pl.num_programs(2) - 1)
    def _():
        o_ref[...] = (acc_ref[...] + b_ref[...].astype(jnp.float32)
                      ).astype(o_ref.dtype)


# ---------------------------------------------------------------------------
# Tile selection (VMEM-budget aware, weight-inclusive)
# ---------------------------------------------------------------------------
def _pick_tiles(B: int, D_in: int, D_out: int, itemsize: int,
                budget: int, sub: int) -> Tuple[int, int, int, int]:
    # K tile: only split when D_in is large AND it divides evenly — garbage in
    # a ragged K block would contaminate valid outputs.
    tk = D_in
    if D_in > 2048:
        for cand in (2048, 1024, 512):
            if D_in % cand == 0:
                tk = cand
                break

    # Cap the batch tile so the "parallel" M axis has >= 2 steps whenever the
    # batch is splittable (lets v7x shard the grid across both TensorCores),
    # while never letting the block exceed the batch itself.
    if B >= 2 * sub:
        tm_cap = _round_up(pl.cdiv(B, 2), sub)
    else:
        tm_cap = max(sub, _round_down(B, sub))

    tm_cands = [t for t in (2048, 1024, 512, 256, 128, 64, 32, 16, 8)
                if t % sub == 0 and t <= tm_cap]
    if not tm_cands:
        tm_cands = [sub]

    tn_cands = []
    for t in (D_out, 2048, 1024, 512, 256, 128):
        if t <= D_out and t % LANE == 0 and t not in tn_cands:
            tn_cands.append(t)

    def vmem_need(tm: int, tn: int) -> int:
        x_buf = 2 * tm * tk * itemsize        # double-buffered x tile
        w_buf = 2 * tk * tn * itemsize        # double-buffered W tile
        b_buf = 2 * 8 * tn * itemsize         # (1, tn) pads to 8 sublanes
        o_buf = 2 * tm * tn * itemsize        # double-buffered out tile
        acc = tm * tn * 4                     # f32 accumulator scratch
        return x_buf + w_buf + b_buf + o_buf + acc

    # Prefer a wide (lane-dense, weight-resident) N tile, then the largest
    # batch tile that still fits the budget.
    for tn in tn_cands:
        for tm in tm_cands:
            need = vmem_need(tm, tn)
            if need <= budget:
                return tm, tn, tk, need
    tm, tn = tm_cands[-1], tn_cands[-1]
    return tm, tn, tk, vmem_need(tm, tn)


# ---------------------------------------------------------------------------
# Wrapper
# ---------------------------------------------------------------------------
def fused_linear_pallas(x: jax.Array, w_cat: jax.Array,
                        b_cat: jax.Array) -> jax.Array:
    """y = x @ W_cat + b_cat.

    x:     (B, D_in)
    w_cat: (D_in, D_out)   with D_out % 128 == 0 (lane-padded)
    b_cat: (1, D_out)
    returns (B, D_out); caller slices per-head columns.
    """
    B, D_in = x.shape
    D_out = w_cat.shape[1]
    assert D_out % LANE == 0, "fused output dim must be lane padded"
    itemsize = jnp.dtype(x.dtype).itemsize
    sub = _sublane(x.dtype)

    # Only micro-batches get padded (a few hundred bytes); everything else
    # relies on Pallas' ragged-edge block masking — no extra HBM passes.
    B_orig = B
    if B < sub:
        x = jnp.pad(x, ((0, sub - B), (0, 0)))
        B = sub

    capacity = _vmem_capacity_bytes()
    budget = int(0.75 * capacity)

    tm, tn, tk, need = _pick_tiles(B, D_in, D_out, itemsize, budget, sub)
    num_m = pl.cdiv(B, tm)
    num_n = pl.cdiv(D_out, tn)
    num_k = pl.cdiv(D_in, tk)

    vmem_limit = min(int(0.8 * capacity), max(32 << 20, need + (8 << 20)))

    cost = pl.CostEstimate(
        flops=2 * B * D_in * D_out,
        transcendentals=0,
        bytes_accessed=(B * D_in + D_in * D_out + D_out + B * D_out) * itemsize,
    )

    y = pl.pallas_call(
        _fused_linear_kernel,
        out_shape=jax.ShapeDtypeStruct((B, D_out), x.dtype),
        grid=(num_m, num_n, num_k),
        in_specs=[
            pl.BlockSpec((tm, tk), lambda i, j, k: (i, k)),
            pl.BlockSpec((tk, tn), lambda i, j, k: (k, j)),
            pl.BlockSpec((1, tn), lambda i, j, k: (0, j)),
        ],
        out_specs=pl.BlockSpec((tm, tn), lambda i, j, k: (i, j)),
        scratch_shapes=[pltpu.VMEM((tm, tn), jnp.float32)],
        compiler_params=pltpu.CompilerParams(
            dimension_semantics=("parallel", "parallel", "arbitrary"),
            vmem_limit_bytes=vmem_limit),
        cost_estimate=cost,
    )(x, w_cat, b_cat)

    return y if B == B_orig else y[:B_orig]


# ---------------------------------------------------------------------------
# Module port
# ---------------------------------------------------------------------------
class DistributionDecoderPallas:
    """JAX/Pallas port of DistributionDecoder.

    param_sizes mirrors `vtype.ptype.param_sizes`, e.g. a Normal distribution
    over a D-dimensional variable has {"mean": D, "scale": D}.  All heads are
    fused into one concatenated, lane-padded linear.
    """

    def __init__(self, dim_in: int, param_sizes: Dict[str, int],
                 dtype=jnp.float32, seed: int = 0):
        self.dim_in = dim_in
        self.param_sizes = dict(param_sizes)
        self.dtype = dtype

        # Per-head params (for reference / inspection), matching nn.Linear's
        # default U(-1/sqrt(fan_in), 1/sqrt(fan_in)) init.
        key = jax.random.PRNGKey(seed)
        bound = 1.0 / (dim_in ** 0.5)
        self.params: Dict[str, Dict[str, jax.Array]] = {}
        ws, bs = [], []
        self.slices: Dict[str, Tuple[int, int]] = {}
        offset = 0
        for name, dim_param in self.param_sizes.items():
            key, kw, kb = jax.random.split(key, 3)
            # Stored already transposed: (dim_in, dim_param).
            w = jax.random.uniform(kw, (dim_in, dim_param), dtype=jnp.float32,
                                   minval=-bound, maxval=bound).astype(dtype)
            b = jax.random.uniform(kb, (1, dim_param), dtype=jnp.float32,
                                   minval=-bound, maxval=bound).astype(dtype)
            self.params[name] = {"w": w, "b": b}
            ws.append(w)
            bs.append(b)
            self.slices[name] = (offset, dim_param)
            offset += dim_param

        d_out_total = offset
        d_out_pad = max(LANE, _round_up(d_out_total, LANE))

        w_cat = jnp.concatenate(ws, axis=1)
        b_cat = jnp.concatenate(bs, axis=1)
        if d_out_pad != d_out_total:
            w_cat = jnp.pad(w_cat, ((0, 0), (0, d_out_pad - d_out_total)))
            b_cat = jnp.pad(b_cat, ((0, 0), (0, d_out_pad - d_out_total)))
        self.w_cat = w_cat.astype(dtype)   # (dim_in, d_out_pad)
        self.b_cat = b_cat.astype(dtype)   # (1, d_out_pad)

    def __call__(self, x: jax.Array) -> Dict[str, jax.Array]:
        x = x.astype(self.dtype)
        # One fused kernel launch; per-head dict produced by slicing
        # (heads here are sub-128 wide, so fused+slice is the right path).
        y = fused_linear_pallas(x, self.w_cat, self.b_cat)
        return {name: y[:, off:off + size]
                for name, (off, size) in self.slices.items()}


# ---------------------------------------------------------------------------
# Reference + test
# ---------------------------------------------------------------------------
def _reference(x, params):
    return {
        name: (x.astype(jnp.float32) @ p["w"].astype(jnp.float32)
               + p["b"].astype(jnp.float32)).astype(x.dtype)
        for name, p in params.items()
    }


if __name__ == "__main__":
    # Small shapes: a Normal VType over an 8-dim variable, hidden size 32.
    batch, dim_in = 2, 32
    param_sizes = {"mean": 8, "scale": 8}

    key = jax.random.PRNGKey(0)
    x = jax.random.normal(key, (batch, dim_in), dtype=jnp.float32)

    decoder = DistributionDecoderPallas(dim_in, param_sizes, dtype=jnp.float32)

    out = decoder(x)
    out = jax.tree_util.tree_map(jax.block_until_ready, out)

    ref = _reference(x, decoder.params)
    for name in param_sizes:
        assert out[name].shape == (batch, param_sizes[name]), out[name].shape
        assert out[name].dtype == x.dtype, out[name].dtype
        assert jnp.allclose(out[name], ref[name], atol=1e-5, rtol=1e-5), name

    # Larger batches: exercise the multi-step "parallel" M grid (>= 2 tiles)
    # and, for the non-aligned batch, the ragged last M block (no wrapper-side
    # padding/slicing HBM passes).
    for big_batch in (1024, 1000):
        xb = jax.random.normal(jax.random.PRNGKey(1), (big_batch, dim_in),
                               dtype=jnp.float32)
        out_b = decoder(xb)
        out_b = jax.tree_util.tree_map(jax.block_until_ready, out_b)
        ref_b = _reference(xb, decoder.params)
        for name in param_sizes:
            assert out_b[name].shape == (big_batch, param_sizes[name])
            assert jnp.allclose(out_b[name], ref_b[name],
                                atol=1e-4, rtol=1e-5), name

    print("KERNEL_OK")
</pallas_src>

<mosaic_0001>
module attributes {stable_mosaic.version = 11 : i64} {
  func.func @_fused_linear_kernel(%arg0: i32, %arg1: i32, %arg2: i32, %arg3: memref<8x32xf32, #tpu.memory_space<vmem>>, %arg4: memref<32x128xf32, #tpu.memory_space<vmem>>, %arg5: memref<1x128xf32, #tpu.memory_space<vmem>>, %arg6: memref<8x128xf32, #tpu.memory_space<vmem>>, %arg7: memref<8x128xf32, #tpu.memory_space<vmem>>) attributes {dimension_semantics = [#tpu.dimension_semantics<parallel>, #tpu.dimension_semantics<parallel>, #tpu.dimension_semantics<arbitrary>], iteration_bounds = array<i64: 1, 1, 1>, scalar_prefetch = 0 : i64, scratch_operands = 1 : i64, tpu.core_type = #tpu.core_type<tc>, window_params = [{transform_indices = @transform_0, window_bounds = array<i64: 8, 32>}, {transform_indices = @transform_1, window_bounds = array<i64: 32, 128>}, {transform_indices = @transform_2, window_bounds = array<i64: 1, 128>}, {transform_indices = @transform_3, window_bounds = array<i64: 8, 128>}]} {
    %c0_i32 = arith.constant 0 : i32
    %0 = arith.cmpi eq, %arg2, %c0_i32 : i32
    %1 = arith.extui %0 : i1 to i32
    %c0_i32_0 = arith.constant 0 : i32
    %2 = arith.cmpi ne, %1, %c0_i32_0 : i32
    scf.if %2 {
      %cst_10 = arith.constant 0.000000e+00 : f32
      %12 = vector.broadcast %cst_10 : f32 to vector<8x128xf32>
      %c0_11 = arith.constant 0 : index
      %c0_12 = arith.constant 0 : index
      %13 = vector.load %arg7[%c0_11, %c0_12] : memref<8x128xf32, #tpu.memory_space<vmem>>, vector<8x128xf32>
      tpu.vector_store %arg7[%c0_11, %c0_12], %12 {strides = array<i32>} : memref<8x128xf32, #tpu.memory_space<vmem>>, vector<8x128xf32>,
    } else {
    }
    %c0 = arith.constant 0 : index
    %c0_1 = arith.constant 0 : index
    %3 = vector.load %arg7[%c0, %c0_1] : memref<8x128xf32, #tpu.memory_space<vmem>>, vector<8x128xf32>
    %c0_2 = arith.constant 0 : index
    %c0_3 = arith.constant 0 : index
    %4 = vector.load %arg3[%c0_2, %c0_3] : memref<8x32xf32, #tpu.memory_space<vmem>>, vector<8x32xf32>
    %c0_4 = arith.constant 0 : index
    %c0_5 = arith.constant 0 : index
    %5 = vector.load %arg4[%c0_4, %c0_5] : memref<32x128xf32, #tpu.memory_space<vmem>>, vector<32x128xf32>
    %cst = arith.constant dense<0.000000e+00> : vector<8x128xf32>
    %6 = tpu.matmul %4, %5, %cst {dimension_numbers = #tpu.dot_dimension_numbers<[1], [0], [0], [1], [0, 0, 1, 1], [], []>} : vector<8x32xf32>, vector<32x128xf32>, vector<8x128xf32> -> vector<8x128xf32>
    %7 = arith.addf %3, %6 : vector<8x128xf32>
    %c0_6 = arith.constant 0 : index
    %c0_7 = arith.constant 0 : index
    %8 = vector.load %arg7[%c0_6, %c0_7] : memref<8x128xf32, #tpu.memory_space<vmem>>, vector<8x128xf32>
    tpu.vector_store %arg7[%c0_6, %c0_7], %7 {strides = array<i32>} : memref<8x128xf32, #tpu.memory_space<vmem>>, vector<8x128xf32>,
    %c0_i32_8 = arith.constant 0 : i32
    %9 = arith.cmpi eq, %arg2, %c0_i32_8 : i32
    %10 = arith.extui %9 : i1 to i32
    %c0_i32_9 = arith.constant 0 : i32
    %11 = arith.cmpi ne, %10, %c0_i32_9 : i32
    scf.if %11 {
      %c0_10 = arith.constant 0 : index
      %c0_11 = arith.constant 0 : index
      %12 = vector.load %arg7[%c0_10, %c0_11] : memref<8x128xf32, #tpu.memory_space<vmem>>, vector<8x128xf32>
      %c0_12 = arith.constant 0 : index
      %c0_13 = arith.constant 0 : index
      %13 = vector.load %arg5[%c0_12, %c0_13] : memref<1x128xf32, #tpu.memory_space<vmem>>, vector<1x128xf32>
      %14 = vector.broadcast %13 : vector<1x128xf32> to vector<8x128xf32>
      %15 = arith.addf %12, %14 : vector<8x128xf32>
      %c0_14 = arith.constant 0 : index
      %c0_15 = arith.constant 0 : index
      %16 = vector.load %arg6[%c0_14, %c0_15] : memref<8x128xf32, #tpu.memory_space<vmem>>, vector<8x128xf32>
      tpu.vector_store %arg6[%c0_14, %c0_15], %15 {strides = array<i32>} : memref<8x128xf32, #tpu.memory_space<vmem>>, vector<8x128xf32>,
    } else {
    }
    return
  }
  func.func @transform_0(%arg0: i32, %arg1: i32, %arg2: i32) -> (i32, i32) {
    %c0_i32 = arith.constant 0 : i32
    return %arg0, %arg2 : i32, i32
  }
  func.func @transform_1(%arg0: i32, %arg1: i32, %arg2: i32) -> (i32, i32) {
    %c0_i32 = arith.constant 0 : i32
    return %arg2, %arg1 : i32, i32
  }
  func.func @transform_2(%arg0: i32, %arg1: i32, %arg2: i32) -> (i32, i32) {
    %c0_i32 = arith.constant 0 : i32
    %c0_i32_0 = arith.constant 0 : i32
    return %c0_i32, %arg1 : i32, i32
  }
  func.func @transform_3(%arg0: i32, %arg1: i32, %arg2: i32) -> (i32, i32) {
    %c0_i32 = arith.constant 0 : i32
    return %arg0, %arg1 : i32, i32
  }
}

</mosaic_0001>

<bundles_post_ra>
// kernel: tpu_custom_call.1
= control target key start
LH: loop header
LB: loop body
LE: loop exit
PB: predicated region body
PF: predicated region fallthrough
CT: control target
= control target key end

     0   :  { %8 = vsyncpa [#allocation4], 0  ;;  %s287_s0 = inlined_call_operand.hbm [shape: f32[8,32], index: 0, kind: input, shape index: {}]   ;;  %s288_s1 = inlined_call_operand.hbm [shape: f32[32,128], index: 1, kind: input, shape index: {}]   ;;  %s289_s2 = inlined_call_operand.vmem [shape: f32[1,128], index: 2, kind: input, shape index: {}]   ;;  %s290_s3 = inlined_call_operand.hbm [shape: f32[8,128], index: 3, kind: output, shape index: {}]  }
   0x1   :  { %9 = vsyncpa [#allocation7], 0 }
   0x2   :  { %10 = vsyncpa [#allocation5], 0  ;;  %s248_s12 = smov [#allocation3]   ;;  %s249_s14 = smov [#allocation6]  }
   0x3   :  { %s17_s13 = sshll.u32 %s248_s12, 4  ;;  %s26_s15 = sshll.u32 %s249_s14, 4  ;;  %s18_s13 = int_to_ptr.vmem [resolvable:$true] %s17_s13  ;;  %s27_s15 = int_to_ptr.vmem [resolvable:$true] %s26_s15 }
   0x4   :  { %s190_s16 = scalar_lea.vmem %s18_s13, 128  ;;  %p195_p1 = scmp.lt.s32.totalorder %s18_s13, %s18_s13 }
   0x5   :  { %p191_p0 = scmp.ne.s32.totalorder %s18_s13, %s190_s16  ;;  %p196_p2 = scmp.lt.s32.totalorder %s190_s16, %s190_s16 }
   0x7   :  { %p197_p3 = por %p196_p2, %p195_p1 }
   0x9   :  { %p198_p4 = pnand %p197_p3, %p191_p0 }
   0xb   :  { %201 = shalt.err (!%p198_p4)
}
   0xc   :  { %20 = dma.hbm_to_vmem [thread:$0]  %s287_s0, 128, %s18_s13, [#allocation4]  }
   0xd   :  { %s210_s19 = scalar_lea.vmem %s27_s15, 512  ;;  %p215_p6 = scmp.lt.s32.totalorder %s27_s15, %s27_s15 }
   0xe   :  { %p211_p5 = scmp.ne.s32.totalorder %s27_s15, %s210_s19  ;;  %p216_p7 = scmp.lt.s32.totalorder %s210_s19, %s210_s19 }
  0x10   :  { %p217_p8 = por %p216_p7, %p215_p6 }
  0x12   :  { %p218_p9 = pnand %p217_p8, %p211_p5 }
  0x14   :  { %221 = shalt.err (!%p218_p9)
}
  0x15   :  { %s250_s20 = smov 128   ;;  %s251_s21 = smov 8  }
  0x16   :  { %32 = dma.hbm_to_vmem [thread:$0]  %s288_s1, 512, %s27_s15, [#allocation7], %s250_s20, %s250_s20, %s251_s21  }
  0x17   :  { %242 = dma.done.wait [#allocation4], 128  }
  0x18   :  { %243 = vsyncadd [#allocation4], 4294967168 }
  0x19   :  { %244 = dma.done.wait [#allocation7], 512  }
  0x1a   :  { %245 = vsyncadd [#allocation7], 4294966784  ;;  %v252_v0 = vmov 0.0   ;;  %vm253_vm0 = vmmov 0   ;;  %v51_v1 = vld [vmem:[#allocation6 + $0x18] sm:$0xff]  ;;  %v50_v2 = vld [vmem:[#allocation6 + $0x10] sm:$0xff] }
  0x1b   :  { %164 = vmatprep.subr.mxu0 %v252_v0  ;;  %172 = vmatprep.mubr.msk.f32.mxu0 %vm253_vm0, %v252_v0  ;;  %v49_v3 = vld [vmem:[#allocation6 + $0x8] sm:$0xff]  ;;  %v48_v4 = vld [vmem:[#allocation6] sm:$0xff]  ;;  %v47_v5 = vld [vmem:[#allocation3] sm:$0xff]  ;;  %vm52_vm1 = vcmask 261120   ;;  %s254_s24 = smov [#allocation8]  }
  0x1c   :  { %165 = vmatpush3.msra.mxu0 %v51_v1  ;;  %v158_v6 = vld [vmem:[%s289_s2] ss:$0 sm:$0xff]  ;;  %s147_s25 = sshll.u32 %s254_s24, 4  ;;  %s148_s25 = int_to_ptr.vmem [resolvable:$true] %s147_s25 }
  0x1d   :  { %166 = vmatprep.subr.mxu0 %v252_v0  ;;  %s222_s26 = scalar_lea.vmem %s148_s25, 128  ;;  %p227_p11 = scmp.lt.s32.totalorder %s148_s25, %s148_s25 }
  0x1e   :  { %167 = vmatpush3.msra.mxu0 %v50_v2  ;;  %p223_p10 = scmp.ne.s32.totalorder %s148_s25, %s222_s26  ;;  %p228_p12 = scmp.lt.s32.totalorder %s222_s26, %s222_s26 }
  0x1f   :  { %168 = vmatprep.subr.mxu0 %v252_v0 }
  0x20   :  { %169 = vmatpush3.msra.mxu0 %v49_v3  ;;  %p229_p13 = por %p228_p12, %p227_p11 }
  0x21   :  { %170 = vmatprep.subr.mxu0 %v252_v0 }
  0x22   :  { %171 = vmatpush3.msra.mxu0 %v48_v4  ;;  %p230_p0 = pnand %p229_p13, %p223_p10 }
  0x23   :  { %173 = vmatmul.mubr.msk.f32.vlgmr.msra.gmra.mxu0 %vm52_vm1, %v47_v5 }
  0xe3   :  { %v122_v7 = vpop.f32.mrf.mxu0 }
  0xe4   :  { %v139_v8 = vadd.f32 %v158_v6, %v122_v7 }
  0xe5   :  { %v174_v9 = vpop.f32.mrf.mxu0 }
  0xe6   :  { %140 = vst [vmem:[#allocation8] sm:$0xff] %v139_v8 }
  0xe7   :  { %233 = shalt.err (!%p230_p0)
}
  0xe8   :  { %150 = dma.vmem_to_hbm [thread:$0]  %s148_s25, 128, %s290_s3, [#allocation5]  }
  0xe9   :  { %246 = dma.done.wait [#allocation5], 128  }
  0xea   :  { %247 = vsyncadd [#allocation5], 4294967168 }
  0xeb   :  { %154 = vsyncpa [#allocation4], 1 }
  0xec   :  { %155 = vsyncpa [#allocation7], 1 }
  0xed   :  { %156 = vsyncpa [#allocation5], 1 }

</bundles_post_ra>
